<compile_context>
chip_gen: v7x
topology: tpu7x:2x2x1
jax: 0.10.0
libtpu: 0.0.40
codegen_flags: <defaults>
</compile_context>

<pallas_src>
import functools

import jax
import jax.numpy as jnp
from jax.experimental import pallas as pl
from jax.experimental.pallas import tpu as pltpu

FLIP_PROB = 0.5


# ---------------------------------------------------------------------------
# plain-JAX helpers (glue, mirror the torch helpers)
# ---------------------------------------------------------------------------
def rescale(x):
    return 2.0 * x - 1.0


def discretize(x):
    return rescale((x > 0).astype(jnp.float32))


def flip_multipliers(key, shape):
    # torch: rands = rescale(uniform) in [-1,1); a flip is allowed iff
    #        rands < FLIP_PROB, i.e. uniform < (FLIP_PROB + 1) / 2  (prob 0.75).
    # The multiplier is -1 when the gate fires, +1 otherwise; it is only applied
    # where value*field < 0 (inside the kernel), matching torch's _update.
    u = jax.random.uniform(key, shape, dtype=jnp.float32)
    return jnp.where(u < (FLIP_PROB + 1.0) * 0.5,
                     jnp.float32(-1.0), jnp.float32(1.0))


# ---------------------------------------------------------------------------
# Pallas kernel 1: Boltzmann sampling chain (compute_fields + stochastic update)
# ---------------------------------------------------------------------------
def gibbs_kernel(vals_ref, w_ref, noise_ref, flip_ref, out_ref, *,
                 num_iters, num_visible, include_visible):
    # TODO(synk): in-kernel TPU hardware PRNG (pltpu.prng_seed/prng_random_bits)
    # has no lowering on this sandbox's interpret path, so per-iteration noise
    # is pre-drawn host-side and passed in; only distributional semantics of the
    # torch RNG are preserved.
    w = w_ref[...]                       # (N, N) bf16, symmetric, zero diagonal
    vals = vals_ref[...]                 # (B, N) f32, entries are exactly ±1
    B, N = out_ref.shape

    if not include_visible:
        # Hoisted out of the loop: mask selecting the visible columns.
        col = jax.lax.broadcasted_iota(jnp.int32, (B, N), 1)
        keep_visible = col < num_visible

    # Fully unrolled: num_iters is a small static constant (3-5), giving the
    # scheduler cross-iteration visibility (elementwise update of step i hides
    # under the MXU latency of the matmul).
    for i in range(num_iters):
        # compute_fields: W @ v per sample == v @ W  (W is symmetric).
        fields = jnp.dot(vals.astype(jnp.bfloat16), w,
                         preferred_element_type=jnp.float32)
        # noisy_fields: fields + (add_noise - sub_noise) * temperature;
        # temperature is already folded into the pre-drawn Laplace noise.
        noisy = fields + noise_ref[i]
        # _update: flip the spin where value*field < 0 and the flip gate fires.
        products = vals * noisy
        new_vals = vals * jnp.where(products < 0.0, flip_ref[i],
                                    jnp.float32(1.0))
        if not include_visible:
            # restore the visible units (first num_visible columns)
            new_vals = jnp.where(keep_visible, vals, new_vals)
        vals = new_vals

    out_ref[...] = vals


def gibbs_sampler(vals, w_bf16, noise, flip_mult, *, num_visible,
                  include_visible):
    B, N = vals.shape
    num_iters = noise.shape[0]
    kern = functools.partial(gibbs_kernel,
                             num_iters=num_iters,
                             num_visible=num_visible,
                             include_visible=include_visible)
    return pl.pallas_call(
        kern,
        out_shape=jax.ShapeDtypeStruct((B, N), jnp.float32),
        in_specs=[
            pl.BlockSpec(memory_space=pltpu.MemorySpace.VMEM),   # vals
            pl.BlockSpec(memory_space=pltpu.MemorySpace.VMEM),   # weights (bf16)
            pl.BlockSpec(memory_space=pltpu.MemorySpace.VMEM),   # noise
            pl.BlockSpec(memory_space=pltpu.MemorySpace.VMEM),   # flip gates
        ],
        out_specs=pl.BlockSpec(memory_space=pltpu.MemorySpace.VMEM),
    )(vals, w_bf16, noise, flip_mult)


# ---------------------------------------------------------------------------
# Pallas kernel 2: objective  sum(W * -(pos - neg)) / N  (no NxN materialised)
# ---------------------------------------------------------------------------
def loss_kernel(in_vals_ref, samp_ref, w_ref, out_ref, *, inv_be, inv_r, inv_n):
    w = w_ref[...]             # (N, N) f32
    iv = in_vals_ref[...]      # (Be, N)
    sv = samp_ref[...]         # (R,  N)
    # sum(W ∘ XᵀX) == sum((X @ W) ∘ X): MXU-shaped contraction, no (N,N)
    # correlation matrices and no transposed-LHS matmul with tiny K.
    pos = jnp.sum(jnp.dot(iv, w, preferred_element_type=jnp.float32) * iv)
    neg = jnp.sum(jnp.dot(sv, w, preferred_element_type=jnp.float32) * sv)
    # result = sum(W ∘ -(pos_corr - neg_corr)) / N
    out_ref[0, 0] = (neg * jnp.float32(inv_r)
                     - pos * jnp.float32(inv_be)) * jnp.float32(inv_n)


def boltzmann_loss(in_vals, sample_vals, w):
    Be, N = in_vals.shape
    R = sample_vals.shape[0]
    kern = functools.partial(loss_kernel,
                             inv_be=1.0 / Be, inv_r=1.0 / R, inv_n=1.0 / N)
    out = pl.pallas_call(
        kern,
        out_shape=jax.ShapeDtypeStruct((1, 1), jnp.float32),
        in_specs=[pl.BlockSpec(memory_space=pltpu.MemorySpace.VMEM)] * 3,
        out_specs=pl.BlockSpec(memory_space=pltpu.MemorySpace.SMEM),
    )(in_vals, sample_vals, w)
    return out[0, 0]


# ---------------------------------------------------------------------------
# BoltzmannTrainWrapper.forward
# ---------------------------------------------------------------------------
def boltzmann_train_forward(in_visible_vals, weights, key, *,
                            num_units, num_hidden, temperature,
                            hidden_setup_iters, num_train_samples,
                            num_rand_samples, num_rand_sample_iters):
    batch = in_visible_vals.shape[0]
    n_total = num_units + num_hidden
    b_exp = batch * num_train_samples

    # fix_weights: symmetrize, zero diagonal (idempotent glue).
    mask = 1.0 - jnp.eye(n_total, dtype=jnp.float32)
    w = mask * ((weights + weights.T) * 0.5)
    w_bf16 = w.astype(jnp.bfloat16)     # matmul operand for the sampling chains

    (k_hid, k_rand, k_noise_h, k_flip_h,
     k_noise_r, k_flip_r) = jax.random.split(key, 6)

    # --- expand_data --------------------------------------------------------
    visible = discretize(in_visible_vals)                        # (batch, U)
    vis_rep = jnp.tile(visible, (num_train_samples, 1))          # (b_exp, U)
    hidden = discretize(rescale(
        jax.random.uniform(k_hid, (b_exp, num_hidden), dtype=jnp.float32)))
    in_vals0 = jnp.concatenate([vis_rep, hidden], axis=1)        # (b_exp, N)

    noise_h = temperature * jax.random.laplace(
        k_noise_h, (hidden_setup_iters, b_exp, n_total), dtype=jnp.float32)
    flip_h = flip_multipliers(k_flip_h, (hidden_setup_iters, b_exp, n_total))
    in_vals = gibbs_sampler(in_vals0, w_bf16, noise_h, flip_h,
                            num_visible=num_units, include_visible=False)

    # --- random-start sampling chain (net.forward / run_iters) --------------
    rand_starts = discretize(rescale(
        jax.random.uniform(k_rand, (num_rand_samples, n_total),
                           dtype=jnp.float32)))
    noise_r = temperature * jax.random.laplace(
        k_noise_r, (num_rand_sample_iters, num_rand_samples, n_total),
        dtype=jnp.float32)
    flip_r = flip_multipliers(
        k_flip_r, (num_rand_sample_iters, num_rand_samples, n_total))
    # TODO(synk): on v7x the two independent chains could be fused into one
    # pallas_call with a parallel grid axis of size 2 (one chain per TensorCore).
    sample_vals = gibbs_sampler(rand_starts, w_bf16, noise_r, flip_r,
                                num_visible=num_units, include_visible=True)

    # --- objective -----------------------------------------------------------
    result = boltzmann_loss(in_vals, sample_vals, w)
    # "if result < 0: return result * 0 else result"
    return jnp.where(result < 0.0, jnp.zeros_like(result), result)


# ---------------------------------------------------------------------------
if __name__ == "__main__":
    NUM_UNITS = 96
    NUM_HIDDEN = 32
    N_TOTAL = NUM_UNITS + NUM_HIDDEN          # 128 -> one lane tile
    BATCH = 2
    NUM_TRAIN_SAMPLES = 4                     # expanded batch = 8 (one sublane tile)
    NUM_RAND_SAMPLES = 8
    NUM_RAND_SAMPLE_ITERS = 5
    HIDDEN_SETUP_ITERS = 3
    TEMPERATURE = 1.0

    key = jax.random.PRNGKey(0)
    k_w, k_x, k_fwd = jax.random.split(key, 3)

    # deterministic xavier_normal-style init of the (N, N) weight matrix
    std = (2.0 / (N_TOTAL + N_TOTAL)) ** 0.5
    weights = jax.random.normal(k_w, (N_TOTAL, N_TOTAL), jnp.float32) * std

    in_visible_vals = jax.random.normal(k_x, (BATCH, NUM_UNITS), jnp.float32)

    fwd = jax.jit(functools.partial(
        boltzmann_train_forward,
        num_units=NUM_UNITS, num_hidden=NUM_HIDDEN,
        temperature=TEMPERATURE, hidden_setup_iters=HIDDEN_SETUP_ITERS,
        num_train_samples=NUM_TRAIN_SAMPLES,
        num_rand_samples=NUM_RAND_SAMPLES,
        num_rand_sample_iters=NUM_RAND_SAMPLE_ITERS))

    result = fwd(in_visible_vals, weights, k_fwd)
    jax.block_until_ready(result)
    assert result.shape == () and result.dtype == jnp.float32
    print("KERNEL_OK")
</pallas_src>

<mosaic_0001>
module attributes {stable_mosaic.version = 11 : i64} {
  func.func @gibbs_kernel(%arg0: memref<8x128xf32, #tpu.memory_space<vmem>>, %arg1: memref<128x128xbf16, #tpu.memory_space<vmem>>, %arg2: memref<3x8x128xf32, #tpu.memory_space<vmem>>, %arg3: memref<3x8x128xf32, #tpu.memory_space<vmem>>, %arg4: memref<8x128xf32, #tpu.memory_space<vmem>>) attributes {dimension_semantics = [], scalar_prefetch = 0 : i64, scratch_operands = 0 : i64, tpu.core_type = #tpu.core_type<tc>} {
    %c0 = arith.constant 0 : index
    %c0_0 = arith.constant 0 : index
    %0 = vector.load %arg1[%c0, %c0_0] : memref<128x128xbf16, #tpu.memory_space<vmem>>, vector<128x128xbf16>
    %c0_1 = arith.constant 0 : index
    %c0_2 = arith.constant 0 : index
    %1 = vector.load %arg0[%c0_1, %c0_2] : memref<8x128xf32, #tpu.memory_space<vmem>>, vector<8x128xf32>
    %2 = tpu.iota {dimensions = array<i32: 1>} : vector<8x128xi32>
    %c96_i32 = arith.constant 96 : i32
    %3 = vector.broadcast %c96_i32 : i32 to vector<8x128xi32>
    %4 = arith.cmpi slt, %2, %3 : vector<8x128xi32>
    %5 = arith.truncf %1 : vector<8x128xf32> to vector<8x128xbf16>
    %cst = arith.constant dense<0.000000e+00> : vector<8x128xf32>
    %6 = tpu.matmul %5, %0, %cst {dimension_numbers = #tpu.dot_dimension_numbers<[1], [0], [0], [1], [0, 0, 1, 1], [], []>} : vector<8x128xbf16>, vector<128x128xbf16>, vector<8x128xf32> -> vector<8x128xf32>
    %c0_3 = arith.constant 0 : index
    %c0_4 = arith.constant 0 : index
    %c0_5 = arith.constant 0 : index
    %7 = vector.load %arg2[%c0_3, %c0_4, %c0_5] : memref<3x8x128xf32, #tpu.memory_space<vmem>>, vector<1x8x128xf32>
    %8 = vector.shape_cast %7 : vector<1x8x128xf32> to vector<8x128xf32>
    %9 = arith.addf %6, %8 : vector<8x128xf32>
    %10 = arith.mulf %1, %9 : vector<8x128xf32>
    %cst_6 = arith.constant 0.000000e+00 : f32
    %11 = vector.broadcast %cst_6 : f32 to vector<8x128xf32>
    %12 = arith.cmpf olt, %10, %11 : vector<8x128xf32>
    %c0_7 = arith.constant 0 : index
    %c0_8 = arith.constant 0 : index
    %c0_9 = arith.constant 0 : index
    %13 = vector.load %arg3[%c0_7, %c0_8, %c0_9] : memref<3x8x128xf32, #tpu.memory_space<vmem>>, vector<1x8x128xf32>
    %14 = vector.shape_cast %13 : vector<1x8x128xf32> to vector<8x128xf32>
    %cst_10 = arith.constant 1.000000e+00 : f32
    %15 = vector.broadcast %cst_10 : f32 to vector<8x128xf32>
    %16 = arith.select %12, %14, %15 : vector<8x128xi1>, vector<8x128xf32>
    %17 = arith.mulf %1, %16 : vector<8x128xf32>
    %18 = arith.select %4, %1, %17 : vector<8x128xi1>, vector<8x128xf32>
    %19 = arith.truncf %18 : vector<8x128xf32> to vector<8x128xbf16>
    %cst_11 = arith.constant dense<0.000000e+00> : vector<8x128xf32>
    %20 = tpu.matmul %19, %0, %cst_11 {dimension_numbers = #tpu.dot_dimension_numbers<[1], [0], [0], [1], [0, 0, 1, 1], [], []>} : vector<8x128xbf16>, vector<128x128xbf16>, vector<8x128xf32> -> vector<8x128xf32>
    %c1 = arith.constant 1 : index
    %c0_12 = arith.constant 0 : index
    %c0_13 = arith.constant 0 : index
    %21 = vector.load %arg2[%c1, %c0_12, %c0_13] : memref<3x8x128xf32, #tpu.memory_space<vmem>>, vector<1x8x128xf32>
    %22 = vector.shape_cast %21 : vector<1x8x128xf32> to vector<8x128xf32>
    %23 = arith.addf %20, %22 : vector<8x128xf32>
    %24 = arith.mulf %18, %23 : vector<8x128xf32>
    %cst_14 = arith.constant 0.000000e+00 : f32
    %25 = vector.broadcast %cst_14 : f32 to vector<8x128xf32>
    %26 = arith.cmpf olt, %24, %25 : vector<8x128xf32>
    %c1_15 = arith.constant 1 : index
    %c0_16 = arith.constant 0 : index
    %c0_17 = arith.constant 0 : index
    %27 = vector.load %arg3[%c1_15, %c0_16, %c0_17] : memref<3x8x128xf32, #tpu.memory_space<vmem>>, vector<1x8x128xf32>
    %28 = vector.shape_cast %27 : vector<1x8x128xf32> to vector<8x128xf32>
    %cst_18 = arith.constant 1.000000e+00 : f32
    %29 = vector.broadcast %cst_18 : f32 to vector<8x128xf32>
    %30 = arith.select %26, %28, %29 : vector<8x128xi1>, vector<8x128xf32>
    %31 = arith.mulf %18, %30 : vector<8x128xf32>
    %32 = arith.select %4, %18, %31 : vector<8x128xi1>, vector<8x128xf32>
    %33 = arith.truncf %32 : vector<8x128xf32> to vector<8x128xbf16>
    %cst_19 = arith.constant dense<0.000000e+00> : vector<8x128xf32>
    %34 = tpu.matmul %33, %0, %cst_19 {dimension_numbers = #tpu.dot_dimension_numbers<[1], [0], [0], [1], [0, 0, 1, 1], [], []>} : vector<8x128xbf16>, vector<128x128xbf16>, vector<8x128xf32> -> vector<8x128xf32>
    %c2 = arith.constant 2 : index
    %c0_20 = arith.constant 0 : index
    %c0_21 = arith.constant 0 : index
    %35 = vector.load %arg2[%c2, %c0_20, %c0_21] : memref<3x8x128xf32, #tpu.memory_space<vmem>>, vector<1x8x128xf32>
    %36 = vector.shape_cast %35 : vector<1x8x128xf32> to vector<8x128xf32>
    %37 = arith.addf %34, %36 : vector<8x128xf32>
    %38 = arith.mulf %32, %37 : vector<8x128xf32>
    %cst_22 = arith.constant 0.000000e+00 : f32
    %39 = vector.broadcast %cst_22 : f32 to vector<8x128xf32>
    %40 = arith.cmpf olt, %38, %39 : vector<8x128xf32>
    %c2_23 = arith.constant 2 : index
    %c0_24 = arith.constant 0 : index
    %c0_25 = arith.constant 0 : index
    %41 = vector.load %arg3[%c2_23, %c0_24, %c0_25] : memref<3x8x128xf32, #tpu.memory_space<vmem>>, vector<1x8x128xf32>
    %42 = vector.shape_cast %41 : vector<1x8x128xf32> to vector<8x128xf32>
    %cst_26 = arith.constant 1.000000e+00 : f32
    %43 = vector.broadcast %cst_26 : f32 to vector<8x128xf32>
    %44 = arith.select %40, %42, %43 : vector<8x128xi1>, vector<8x128xf32>
    %45 = arith.mulf %32, %44 : vector<8x128xf32>
    %46 = arith.select %4, %32, %45 : vector<8x128xi1>, vector<8x128xf32>
    %c0_27 = arith.constant 0 : index
    %c0_28 = arith.constant 0 : index
    %47 = vector.load %arg4[%c0_27, %c0_28] : memref<8x128xf32, #tpu.memory_space<vmem>>, vector<8x128xf32>
    tpu.vector_store %arg4[%c0_27, %c0_28], %46 {strides = array<i32>} : memref<8x128xf32, #tpu.memory_space<vmem>>, vector<8x128xf32>,
    return
  }
}

module attributes {stable_mosaic.version = 11 : i64} {
  func.func @gibbs_kernel(%arg0: memref<8x128xf32, #tpu.memory_space<vmem>>, %arg1: memref<128x128xbf16, #tpu.memory_space<vmem>>, %arg2: memref<5x8x128xf32, #tpu.memory_space<vmem>>, %arg3: memref<5x8x128xf32, #tpu.memory_space<vmem>>, %arg4: memref<8x128xf32, #tpu.memory_space<vmem>>) attributes {dimension_semantics = [], scalar_prefetch = 0 : i64, scratch_operands = 0 : i64, tpu.core_type = #tpu.core_type<tc>} {
    %c0 = arith.constant 0 : index
    %c0_0 = arith.constant 0 : index
    %0 = vector.load %arg1[%c0, %c0_0] : memref<128x128xbf16, #tpu.memory_space<vmem>>, vector<128x128xbf16>
    %c0_1 = arith.constant 0 : index
    %c0_2 = arith.constant 0 : index
    %1 = vector.load %arg0[%c0_1, %c0_2] : memref<8x128xf32, #tpu.memory_space<vmem>>, vector<8x128xf32>
    %2 = arith.truncf %1 : vector<8x128xf32> to vector<8x128xbf16>
    %cst = arith.constant dense<0.000000e+00> : vector<8x128xf32>
    %3 = tpu.matmul %2, %0, %cst {dimension_numbers = #tpu.dot_dimension_numbers<[1], [0], [0], [1], [0, 0, 1, 1], [], []>} : vector<8x128xbf16>, vector<128x128xbf16>, vector<8x128xf32> -> vector<8x128xf32>
    %c0_3 = arith.constant 0 : index
    %c0_4 = arith.constant 0 : index
    %c0_5 = arith.constant 0 : index
    %4 = vector.load %arg2[%c0_3, %c0_4, %c0_5] : memref<5x8x128xf32, #tpu.memory_space<vmem>>, vector<1x8x128xf32>
    %5 = vector.shape_cast %4 : vector<1x8x128xf32> to vector<8x128xf32>
    %6 = arith.addf %3, %5 : vector<8x128xf32>
    %7 = arith.mulf %1, %6 : vector<8x128xf32>
    %cst_6 = arith.constant 0.000000e+00 : f32
    %8 = vector.broadcast %cst_6 : f32 to vector<8x128xf32>
    %9 = arith.cmpf olt, %7, %8 : vector<8x128xf32>
    %c0_7 = arith.constant 0 : index
    %c0_8 = arith.constant 0 : index
    %c0_9 = arith.constant 0 : index
    %10 = vector.load %arg3[%c0_7, %c0_8, %c0_9] : memref<5x8x128xf32, #tpu.memory_space<vmem>>, vector<1x8x128xf32>
    %11 = vector.shape_cast %10 : vector<1x8x128xf32> to vector<8x128xf32>
    %cst_10 = arith.constant 1.000000e+00 : f32
    %12 = vector.broadcast %cst_10 : f32 to vector<8x128xf32>
    %13 = arith.select %9, %11, %12 : vector<8x128xi1>, vector<8x128xf32>
    %14 = arith.mulf %1, %13 : vector<8x128xf32>
    %15 = arith.truncf %14 : vector<8x128xf32> to vector<8x128xbf16>
    %cst_11 = arith.constant dense<0.000000e+00> : vector<8x128xf32>
    %16 = tpu.matmul %15, %0, %cst_11 {dimension_numbers = #tpu.dot_dimension_numbers<[1], [0], [0], [1], [0, 0, 1, 1], [], []>} : vector<8x128xbf16>, vector<128x128xbf16>, vector<8x128xf32> -> vector<8x128xf32>
    %c1 = arith.constant 1 : index
    %c0_12 = arith.constant 0 : index
    %c0_13 = arith.constant 0 : index
    %17 = vector.load %arg2[%c1, %c0_12, %c0_13] : memref<5x8x128xf32, #tpu.memory_space<vmem>>, vector<1x8x128xf32>
    %18 = vector.shape_cast %17 : vector<1x8x128xf32> to vector<8x128xf32>
    %19 = arith.addf %16, %18 : vector<8x128xf32>
    %20 = arith.mulf %14, %19 : vector<8x128xf32>
    %cst_14 = arith.constant 0.000000e+00 : f32
    %21 = vector.broadcast %cst_14 : f32 to vector<8x128xf32>
    %22 = arith.cmpf olt, %20, %21 : vector<8x128xf32>
    %c1_15 = arith.constant 1 : index
    %c0_16 = arith.constant 0 : index
    %c0_17 = arith.constant 0 : index
    %23 = vector.load %arg3[%c1_15, %c0_16, %c0_17] : memref<5x8x128xf32, #tpu.memory_space<vmem>>, vector<1x8x128xf32>
    %24 = vector.shape_cast %23 : vector<1x8x128xf32> to vector<8x128xf32>
    %cst_18 = arith.constant 1.000000e+00 : f32
    %25 = vector.broadcast %cst_18 : f32 to vector<8x128xf32>
    %26 = arith.select %22, %24, %25 : vector<8x128xi1>, vector<8x128xf32>
    %27 = arith.mulf %14, %26 : vector<8x128xf32>
    %28 = arith.truncf %27 : vector<8x128xf32> to vector<8x128xbf16>
    %cst_19 = arith.constant dense<0.000000e+00> : vector<8x128xf32>
    %29 = tpu.matmul %28, %0, %cst_19 {dimension_numbers = #tpu.dot_dimension_numbers<[1], [0], [0], [1], [0, 0, 1, 1], [], []>} : vector<8x128xbf16>, vector<128x128xbf16>, vector<8x128xf32> -> vector<8x128xf32>
    %c2 = arith.constant 2 : index
    %c0_20 = arith.constant 0 : index
    %c0_21 = arith.constant 0 : index
    %30 = vector.load %arg2[%c2, %c0_20, %c0_21] : memref<5x8x128xf32, #tpu.memory_space<vmem>>, vector<1x8x128xf32>
    %31 = vector.shape_cast %30 : vector<1x8x128xf32> to vector<8x128xf32>
    %32 = arith.addf %29, %31 : vector<8x128xf32>
    %33 = arith.mulf %27, %32 : vector<8x128xf32>
    %cst_22 = arith.constant 0.000000e+00 : f32
    %34 = vector.broadcast %cst_22 : f32 to vector<8x128xf32>
    %35 = arith.cmpf olt, %33, %34 : vector<8x128xf32>
    %c2_23 = arith.constant 2 : index
    %c0_24 = arith.constant 0 : index
    %c0_25 = arith.constant 0 : index
    %36 = vector.load %arg3[%c2_23, %c0_24, %c0_25] : memref<5x8x128xf32, #tpu.memory_space<vmem>>, vector<1x8x128xf32>
    %37 = vector.shape_cast %36 : vector<1x8x128xf32> to vector<8x128xf32>
    %cst_26 = arith.constant 1.000000e+00 : f32
    %38 = vector.broadcast %cst_26 : f32 to vector<8x128xf32>
    %39 = arith.select %35, %37, %38 : vector<8x128xi1>, vector<8x128xf32>
    %40 = arith.mulf %27, %39 : vector<8x128xf32>
    %41 = arith.truncf %40 : vector<8x128xf32> to vector<8x128xbf16>
    %cst_27 = arith.constant dense<0.000000e+00> : vector<8x128xf32>
    %42 = tpu.matmul %41, %0, %cst_27 {dimension_numbers = #tpu.dot_dimension_numbers<[1], [0], [0], [1], [0, 0, 1, 1], [], []>} : vector<8x128xbf16>, vector<128x128xbf16>, vector<8x128xf32> -> vector<8x128xf32>
    %c3 = arith.constant 3 : index
    %c0_28 = arith.constant 0 : index
    %c0_29 = arith.constant 0 : index
    %43 = vector.load %arg2[%c3, %c0_28, %c0_29] : memref<5x8x128xf32, #tpu.memory_space<vmem>>, vector<1x8x128xf32>
    %44 = vector.shape_cast %43 : vector<1x8x128xf32> to vector<8x128xf32>
    %45 = arith.addf %42, %44 : vector<8x128xf32>
    %46 = arith.mulf %40, %45 : vector<8x128xf32>
    %cst_30 = arith.constant 0.000000e+00 : f32
    %47 = vector.broadcast %cst_30 : f32 to vector<8x128xf32>
    %48 = arith.cmpf olt, %46, %47 : vector<8x128xf32>
    %c3_31 = arith.constant 3 : index
    %c0_32 = arith.constant 0 : index
    %c0_33 = arith.constant 0 : index
    %49 = vector.load %arg3[%c3_31, %c0_32, %c0_33] : memref<5x8x128xf32, #tpu.memory_space<vmem>>, vector<1x8x128xf32>
    %50 = vector.shape_cast %49 : vector<1x8x128xf32> to vector<8x128xf32>
    %cst_34 = arith.constant 1.000000e+00 : f32
    %51 = vector.broadcast %cst_34 : f32 to vector<8x128xf32>
    %52 = arith.select %48, %50, %51 : vector<8x128xi1>, vector<8x128xf32>
    %53 = arith.mulf %40, %52 : vector<8x128xf32>
    %54 = arith.truncf %53 : vector<8x128xf32> to vector<8x128xbf16>
    %cst_35 = arith.constant dense<0.000000e+00> : vector<8x128xf32>
    %55 = tpu.matmul %54, %0, %cst_35 {dimension_numbers = #tpu.dot_dimension_numbers<[1], [0], [0], [1], [0, 0, 1, 1], [], []>} : vector<8x128xbf16>, vector<128x128xbf16>, vector<8x128xf32> -> vector<8x128xf32>
    %c4 = arith.constant 4 : index
    %c0_36 = arith.constant 0 : index
    %c0_37 = arith.constant 0 : index
    %56 = vector.load %arg2[%c4, %c0_36, %c0_37] : memref<5x8x128xf32, #tpu.memory_space<vmem>>, vector<1x8x128xf32>
    %57 = vector.shape_cast %56 : vector<1x8x128xf32> to vector<8x128xf32>
    %58 = arith.addf %55, %57 : vector<8x128xf32>
    %59 = arith.mulf %53, %58 : vector<8x128xf32>
    %cst_38 = arith.constant 0.000000e+00 : f32
    %60 = vector.broadcast %cst_38 : f32 to vector<8x128xf32>
    %61 = arith.cmpf olt, %59, %60 : vector<8x128xf32>
    %c4_39 = arith.constant 4 : index
    %c0_40 = arith.constant 0 : index
    %c0_41 = arith.constant 0 : index
    %62 = vector.load %arg3[%c4_39, %c0_40, %c0_41] : memref<5x8x128xf32, #tpu.memory_space<vmem>>, vector<1x8x128xf32>
    %63 = vector.shape_cast %62 : vector<1x8x128xf32> to vector<8x128xf32>
    %cst_42 = arith.constant 1.000000e+00 : f32
    %64 = vector.broadcast %cst_42 : f32 to vector<8x128xf32>
    %65 = arith.select %61, %63, %64 : vector<8x128xi1>, vector<8x128xf32>
    %66 = arith.mulf %53, %65 : vector<8x128xf32>
    %c0_43 = arith.constant 0 : index
    %c0_44 = arith.constant 0 : index
    %67 = vector.load %arg4[%c0_43, %c0_44] : memref<8x128xf32, #tpu.memory_space<vmem>>, vector<8x128xf32>
    tpu.vector_store %arg4[%c0_43, %c0_44], %66 {strides = array<i32>} : memref<8x128xf32, #tpu.memory_space<vmem>>, vector<8x128xf32>,
    return
  }
}

module attributes {stable_mosaic.version = 11 : i64} {
  func.func @loss_kernel(%arg0: memref<8x128xf32, #tpu.memory_space<vmem>>, %arg1: memref<8x128xf32, #tpu.memory_space<vmem>>, %arg2: memref<128x128xf32, #tpu.memory_space<vmem>>, %arg3: memref<1x1xf32, #tpu.memory_space<smem>>) attributes {dimension_semantics = [], scalar_prefetch = 0 : i64, scratch_operands = 0 : i64, tpu.core_type = #tpu.core_type<tc>} {
    %c0 = arith.constant 0 : index
    %c0_0 = arith.constant 0 : index
    %0 = vector.load %arg2[%c0, %c0_0] : memref<128x128xf32, #tpu.memory_space<vmem>>, vector<128x128xf32>
    %c0_1 = arith.constant 0 : index
    %c0_2 = arith.constant 0 : index
    %1 = vector.load %arg0[%c0_1, %c0_2] : memref<8x128xf32, #tpu.memory_space<vmem>>, vector<8x128xf32>
    %c0_3 = arith.constant 0 : index
    %c0_4 = arith.constant 0 : index
    %2 = vector.load %arg1[%c0_3, %c0_4] : memref<8x128xf32, #tpu.memory_space<vmem>>, vector<8x128xf32>
    %cst = arith.constant dense<0.000000e+00> : vector<8x128xf32>
    %3 = tpu.matmul %1, %0, %cst {dimension_numbers = #tpu.dot_dimension_numbers<[1], [0], [0], [1], [0, 0, 1, 1], [], []>} : vector<8x128xf32>, vector<128x128xf32>, vector<8x128xf32> -> vector<8x128xf32>
    %4 = arith.mulf %3, %1 : vector<8x128xf32>
    %5 = vector.shape_cast %4 : vector<8x128xf32> to vector<1x8x128xf32>
    %cst_5 = arith.constant dense<0.000000e+00> : vector<1xf32>
    %6 = vector.multi_reduction <add>, %5, %cst_5 [1, 2] : vector<1x8x128xf32> to vector<1xf32>
    %7 = vector.shape_cast %6 : vector<1xf32> to vector<1x1x1xf32>
    %8 = vector.extract %7[0, 0, 0] : f32 from vector<1x1x1xf32>
    %cst_6 = arith.constant dense<0.000000e+00> : vector<8x128xf32>
    %9 = tpu.matmul %2, %0, %cst_6 {dimension_numbers = #tpu.dot_dimension_numbers<[1], [0], [0], [1], [0, 0, 1, 1], [], []>} : vector<8x128xf32>, vector<128x128xf32>, vector<8x128xf32> -> vector<8x128xf32>
    %10 = arith.mulf %9, %2 : vector<8x128xf32>
    %11 = vector.shape_cast %10 : vector<8x128xf32> to vector<1x8x128xf32>
    %cst_7 = arith.constant dense<0.000000e+00> : vector<1xf32>
    %12 = vector.multi_reduction <add>, %11, %cst_7 [1, 2] : vector<1x8x128xf32> to vector<1xf32>
    %13 = vector.shape_cast %12 : vector<1xf32> to vector<1x1x1xf32>
    %14 = vector.extract %13[0, 0, 0] : f32 from vector<1x1x1xf32>
    %cst_8 = arith.constant 1.250000e-01 : f32
    %15 = arith.mulf %14, %cst_8 : f32
    %cst_9 = arith.constant 1.250000e-01 : f32
    %16 = arith.mulf %8, %cst_9 : f32
    %17 = arith.subf %15, %16 : f32
    %cst_10 = arith.constant 7.812500e-03 : f32
    %18 = arith.mulf %17, %cst_10 : f32
    %c0_11 = arith.constant 0 : index
    %c0_12 = arith.constant 0 : index
    %19 = memref.load %arg3[%c0_11, %c0_12] : memref<1x1xf32, #tpu.memory_space<smem>>
    memref.store %18, %arg3[%c0_11, %c0_12] : memref<1x1xf32, #tpu.memory_space<smem>>
    return
  }
}

</mosaic_0001>

<bundles_post_ra>
// kernel: boltzmann_train_forward.5
= control target key start
LH: loop header
LB: loop body
LE: loop exit
PB: predicated region body
PF: predicated region fallthrough
CT: control target
= control target key end

     0   :  { %v348_v0 = vmov 0.0   ;;  %vm349_vm0 = vmmov 0   ;;  %v35_v12 = vlaneseq  ;;  %s438_s1 = inlined_call_operand.vmem [shape: bf16[128,128], index: 1, kind: input, shape index: {}]   ;;  %s439_s0 = inlined_call_operand.vmem [shape: f32[8,128], index: 0, kind: input, shape index: {}]   ;;  %s440_s2 = inlined_call_operand.vmem [shape: f32[3,8,128], index: 2, kind: input, shape index: {}]   ;;  %s441_s3 = inlined_call_operand.vmem [shape: f32[3,8,128], index: 3, kind: input, shape index: {}]   ;;  %s442_s4 = inlined_call_operand.vmem [shape: f32[8,128], index: 4, kind: output, shape index: {}]  }
   0x1   :  { %278 = vmatprep.subr.bf16.mxu0 %v348_v0  ;;  %v340_v1 = vld [vmem:[%s438_s1] sm:$0xff]   ;;  %294 = vmatprep.mubr.msk.bf16.mxu0 %vm349_vm0, %v348_v0  ;;  %v341_v2 = vld [vmem:[%s438_s1 + $0x8] sm:$0xff]   ;;  %v342_v3 = vld [vmem:[%s438_s1 + $0x10] sm:$0xff]  }
   0x2   :  { %298 = vmatprep.subr.bf16.mxu1 %v348_v0  ;;  %314 = vmatprep.mubr.msk.bf16.mxu1 %vm349_vm0, %v348_v0  ;;  %v343_v4 = vld [vmem:[%s438_s1 + $0x18] sm:$0xff]   ;;  %v344_v5 = vld [vmem:[%s438_s1 + $0x20] sm:$0xff]   ;;  %v345_v6 = vld [vmem:[%s438_s1 + $0x28] sm:$0xff]   ;;  %v36_v17 = vand.u32 127, %v35_v12 }
   0x3   :  { %279 = vmatpush3.bf16.msra.mxu0 %v340_v1  ;;  %299 = vmatpush3.bf16.msra.mxu1 %v340_v1  ;;  %v346_v7 = vld [vmem:[%s438_s1 + $0x30] sm:$0xff]   ;;  %v347_v8 = vld [vmem:[%s438_s1 + $0x38] sm:$0xff]   ;;  %v404_v9 = vld [vmem:[%s439_s0] sm:$0xff] }
   0x4   :  { %280 = vmatprep.subr.bf16.mxu0 %v348_v0  ;;  %300 = vmatprep.subr.bf16.mxu1 %v348_v0  ;;  %v38_v10 = vpack.c.bf16 %v404_v9, %v404_v9  ;;  %v39_v11 = vld [vmem:[%s440_s2] sm:$0xff]  ;;  %vm37_vm2 = vcmp.lt.s32.totalorder %v36_v17, 96  ;;  %v247_v25 = vld [vmem:[%s440_s2 + $0x8] sm:$0xff]  ;;  %v249_v37 = vld [vmem:[%s440_s2 + $0x10] sm:$0xff] }
   0x5   :  { %v130_v19 = vld [vmem:[%s441_s3] sm:$0xff]  ;;  %v248_v31 = vld [vmem:[%s441_s3 + $0x8] sm:$0xff]  ;;  %v250_v43 = vld [vmem:[%s441_s3 + $0x10] sm:$0xff] }
   0x7   :  { %281 = vmatpush3.bf16.msra.mxu0 %v341_v2  ;;  %301 = vmatpush3.bf16.msra.mxu1 %v341_v2 }
   0x8   :  { %282 = vmatprep.subr.bf16.mxu0 %v348_v0  ;;  %302 = vmatprep.subr.bf16.mxu1 %v348_v0 }
   0xb   :  { %283 = vmatpush3.bf16.msra.mxu0 %v342_v3  ;;  %303 = vmatpush3.bf16.msra.mxu1 %v342_v3 }
   0xc   :  { %284 = vmatprep.subr.bf16.mxu0 %v348_v0  ;;  %304 = vmatprep.subr.bf16.mxu1 %v348_v0 }
   0xf   :  { %285 = vmatpush3.bf16.msra.mxu0 %v343_v4  ;;  %305 = vmatpush3.bf16.msra.mxu1 %v343_v4 }
  0x10   :  { %286 = vmatprep.subr.bf16.mxu0 %v348_v0  ;;  %306 = vmatprep.subr.bf16.mxu1 %v348_v0 }
  0x13   :  { %287 = vmatpush3.bf16.msra.mxu0 %v344_v5  ;;  %307 = vmatpush3.bf16.msra.mxu1 %v344_v5 }
  0x14   :  { %288 = vmatprep.subr.bf16.mxu0 %v348_v0  ;;  %308 = vmatprep.subr.bf16.mxu1 %v348_v0 }
  0x17   :  { %289 = vmatpush3.bf16.msra.mxu0 %v345_v6  ;;  %309 = vmatpush3.bf16.msra.mxu1 %v345_v6 }
  0x18   :  { %290 = vmatprep.subr.bf16.mxu0 %v348_v0  ;;  %310 = vmatprep.subr.bf16.mxu1 %v348_v0 }
  0x1b   :  { %291 = vmatpush3.bf16.msra.mxu0 %v346_v7  ;;  %311 = vmatpush3.bf16.msra.mxu1 %v346_v7 }
  0x1c   :  { %292 = vmatprep.subr.bf16.mxu0 %v348_v0  ;;  %312 = vmatprep.subr.bf16.mxu1 %v348_v0 }
  0x1f   :  { %293 = vmatpush3.bf16.msra.mxu0 %v347_v8  ;;  %313 = vmatpush3.bf16.msra.mxu1 %v347_v8 }
  0x20   :  { %318 = vmatprep.subr.bf16.mxu0 %v348_v0 }
  0x22   :  { %295 = vmatmul.mubr.bf16.vlgmr.msra.gmra.mrb[0].mxu0 %v38_v10 }
  0x23   :  { %319 = vmatpush3.bf16.msra.mxu0 %v340_v1  ;;  %334 = vmatprep.mubr.msk.bf16.mxu0 %vm349_vm0, %v348_v0 }
  0x24   :  { %320 = vmatprep.subr.bf16.mxu0 %v348_v0 }
  0x27   :  { %321 = vmatpush3.bf16.msra.mxu0 %v341_v2 }
  0x28   :  { %322 = vmatprep.subr.bf16.mxu0 %v348_v0 }
  0x2b   :  { %323 = vmatpush3.bf16.msra.mxu0 %v342_v3 }
  0x2c   :  { %324 = vmatprep.subr.bf16.mxu0 %v348_v0 }
  0x2f   :  { %325 = vmatpush3.bf16.msra.mxu0 %v343_v4 }
  0x30   :  { %326 = vmatprep.subr.bf16.mxu0 %v348_v0 }
  0x33   :  { %327 = vmatpush3.bf16.msra.mxu0 %v344_v5 }
  0x34   :  { %328 = vmatprep.subr.bf16.mxu0 %v348_v0 }
  0x37   :  { %329 = vmatpush3.bf16.msra.mxu0 %v345_v6 }
  0x38   :  { %330 = vmatprep.subr.bf16.mxu0 %v348_v0 }
  0x3b   :  { %331 = vmatpush3.bf16.msra.mxu0 %v346_v7 }
  0x3c   :  { %332 = vmatprep.subr.bf16.mxu0 %v348_v0 }
  0x3f   :  { %333 = vmatpush3.bf16.msra.mxu0 %v347_v8 }
  0xf5   :  { %v122_v13 = vpop.f32.mrb[0].mxu0 }
  0xf6   :  { %v123_v14 = vadd.f32 %v122_v13, %v39_v11  ;;  %v296_v15 = vpop.f32.mrb[1].mxu0 }
  0xf7   :  { %v125_v16 = vpop.f32.mrb[2].mxu0 }
  0xf8   :  { %v128_v18 = vmul.f32 %v123_v14, %v404_v9  ;;  %v297_v20 = vpop.f32.mrb[3].mxu0 }
  0xfa   :  { %vm129_vm1 = vcmp.lt.f32.partialorder %v128_v18, 0.0 }
  0xfb   :  { %v131_v21 = vsel %vm129_vm1, %v130_v19, 1.0 }
  0xfc   :  { %v132_v22 = vmul.f32 %v131_v21, %v404_v9 }
  0xfe   :  { %v133_v23 = vsel %vm37_vm2, %v404_v9, %v132_v22 }
  0xff   :  { %v134_v24 = vpack.c.bf16 %v133_v23, %v133_v23 }
 0x101   :  { %315 = vmatmul.mubr.bf16.vlgmr.msra.gmra.mrb[0].mxu1 %v134_v24 }
 0x1d4   :  { %v171_v26 = vpop.f32.mrb[0].mxu1 }
 0x1d5   :  { %v172_v27 = vadd.f32 %v247_v25, %v171_v26  ;;  %v316_v28 = vpop.f32.mrb[1].mxu1 }
 0x1d6   :  { %v174_v29 = vpop.f32.mrb[2].mxu1 }
 0x1d7   :  { %v177_v30 = vmul.f32 %v172_v27, %v133_v23  ;;  %v317_v32 = vpop.f32.mrb[3].mxu1 }
 0x1d9   :  { %vm178_vm3 = vcmp.lt.f32.partialorder %v177_v30, 0.0 }
 0x1da   :  { %v181_v33 = vsel %vm178_vm3, %v248_v31, 1.0 }
 0x1db   :  { %v182_v34 = vmul.f32 %v181_v33, %v133_v23 }
 0x1dd   :  { %v183_v35 = vsel %vm37_vm2, %v404_v9, %v182_v34 }
 0x1de   :  { %v184_v36 = vpack.c.bf16 %v183_v35, %v183_v35 }
 0x1e0   :  { %335 = vmatmul.mubr.bf16.vlgmr.msra.gmra.mrb[4].mxu0 %v184_v36 }
 0x2b3   :  { %v221_v38 = vpop.f32.mrb[4].mxu0 }
 0x2b4   :  { %v222_v39 = vadd.f32 %v249_v37, %v221_v38  ;;  %v336_v40 = vpop.f32.mrb[5].mxu0 }
 0x2b5   :  { %v224_v41 = vpop.f32.mrb[6].mxu0 }
 0x2b6   :  { %v227_v42 = vmul.f32 %v222_v39, %v183_v35  ;;  %v337_v44 = vpop.f32.mrb[7].mxu0 }
 0x2b8   :  { %vm228_vm4 = vcmp.lt.f32.partialorder %v227_v42, 0.0 }
 0x2b9   :  { %v231_v45 = vsel %vm228_vm4, %v250_v43, 1.0 }
 0x2ba   :  { %v232_v46 = vmul.f32 %v231_v45, %v183_v35 }
 0x2bc   :  { %v233_v47 = vsel %vm37_vm2, %v404_v9, %v232_v46 }
 0x2bd   :  { %234 = vst [vmem:[%s442_s4] sm:$0xff] %v233_v47 }

// kernel: boltzmann_train_forward.7
= control target key start
LH: loop header
LB: loop body
LE: loop exit
PB: predicated region body
PF: predicated region fallthrough
CT: control target
= control target key end

     0   :  { %v384_v3 = vmov 0.0|0.0   ;;  %vm385_vm0 = vmmov 0   ;;  %v386_v6 = vmov 0.0   ;;  %s474_s0 = inlined_call_operand.vmem [shape: f32[8,128], index: 0, kind: input, shape index: {}]   ;;  %s475_s1 = inlined_call_operand.vmem [shape: f32[8,128], index: 1, kind: input, shape index: {}]   ;;  %s476_s2 = inlined_call_operand.vmem [shape: f32[128,128], index: 2, kind: input, shape index: {}]   ;;  %s477_s3 = inlined_call_operand.hbm [shape: f32[1,1], index: 3, kind: output, shape index: {}]  }
   0x1   :  { %v15_v0 = vld [vmem:[%s476_s2] sm:$0xff]  ;;  %v16_v1 = vld [vmem:[%s476_s2 + $0x8] sm:$0xff]  ;;  %v17_v2 = vld [vmem:[%s476_s2 + $0x10] sm:$0xff]  ;;  %316 = vmatprep.subr.bf16.mxu0 %v384_v3  ;;  %340 = vmatprep.subr.bf16.mxu1 %v384_v3 }
   0x2   :  { %v317_v4 = vpack.c.bf16 %v16_v1, %v15_v0  ;;  %v18_v5 = vld [vmem:[%s476_s2 + $0x18] sm:$0xff]  ;;  %278 = vmatprep.mubr.msk.f32.mxu0 %vm385_vm0, %v386_v6  ;;  %313 = vmatprep.mubr.msk.f32.mxu1 %vm385_vm0, %v386_v6  ;;  %v19_v8 = vld [vmem:[%s476_s2 + $0x20] sm:$0xff]  ;;  %v20_v9 = vld [vmem:[%s476_s2 + $0x28] sm:$0xff] }
   0x3   :  { %v320_v7 = vpack.c.bf16 %v18_v5, %v17_v2 }
   0x4   :  { %318 = vmatpush3.bf16.msra.mxu0 %v317_v4  ;;  %342 = vmatpush3.bf16.msra.mxu1 %v317_v4 }
   0x5   :  { %319 = vmatprep.subr.bf16.mxu0 %v384_v3  ;;  %343 = vmatprep.subr.bf16.mxu1 %v384_v3 }
   0x6   :  { %8 = vsyncpa [#allocation3], 0  ;;  %v323_v10 = vpack.c.bf16 %v20_v9, %v19_v8  ;;  %v21_v11 = vld [vmem:[%s476_s2 + $0x30] sm:$0xff]  ;;  %v22_v12 = vld [vmem:[%s476_s2 + $0x38] sm:$0xff]  ;;  %s372_s26 = scalar_lea.hbm %s477_s3, 16 }
   0x7   :  { %v326_v13 = vpack.c.bf16 %v22_v12, %v21_v11  ;;  %v23_v14 = vld [vmem:[%s476_s2 + $0x40] sm:$0xff]  ;;  %v24_v15 = vld [vmem:[%s476_s2 + $0x48] sm:$0xff]  ;;  %v25_v17 = vld [vmem:[%s476_s2 + $0x50] sm:$0xff]  ;;  %p373_p0 = scmp.ne.s32.totalorder %s477_s3, %s372_s26  ;;  %p376_p1 = scmp.lt.u32.totalorder %s372_s26, %s477_s3 }
   0x8   :  { %321 = vmatpush3.bf16.msra.mxu0 %v320_v7  ;;  %345 = vmatpush3.bf16.msra.mxu1 %v320_v7  ;;  %v329_v16 = vpack.c.bf16 %v24_v15, %v23_v14  ;;  %v26_v18 = vld [vmem:[%s476_s2 + $0x58] sm:$0xff]  ;;  %v27_v20 = vld [vmem:[%s476_s2 + $0x60] sm:$0xff]  ;;  %v28_v21 = vld [vmem:[%s476_s2 + $0x68] sm:$0xff] }
   0x9   :  { %322 = vmatprep.subr.bf16.mxu0 %v384_v3  ;;  %346 = vmatprep.subr.bf16.mxu1 %v384_v3  ;;  %v332_v19 = vpack.c.bf16 %v26_v18, %v25_v17  ;;  %v335_v22 = vpack.c.bf16 %v28_v21, %v27_v20  ;;  %v29_v23 = vld [vmem:[%s476_s2 + $0x70] sm:$0xff]  ;;  %v30_v24 = vld [vmem:[%s476_s2 + $0x78] sm:$0xff]  ;;  %v31_v26 = vld [vmem:[%s474_s0] sm:$0xff]  ;;  %p378_p2 = pnand %p376_p1, %p373_p0 }
   0xa   :  { %v338_v25 = vpack.c.bf16 %v30_v24, %v29_v23  ;;  %v32_v27 = vld [vmem:[%s475_s1] sm:$0xff] }
   0xc   :  { %324 = vmatpush3.bf16.msra.mxu0 %v323_v10  ;;  %348 = vmatpush3.bf16.msra.mxu1 %v323_v10 }
   0xd   :  { %325 = vmatprep.subr.bf16.mxu0 %v384_v3  ;;  %349 = vmatprep.subr.bf16.mxu1 %v384_v3 }
  0x10   :  { %327 = vmatpush3.bf16.msra.mxu0 %v326_v13  ;;  %351 = vmatpush3.bf16.msra.mxu1 %v326_v13 }
  0x11   :  { %328 = vmatprep.subr.bf16.mxu0 %v384_v3  ;;  %352 = vmatprep.subr.bf16.mxu1 %v384_v3 }
  0x14   :  { %330 = vmatpush3.bf16.msra.mxu0 %v329_v16  ;;  %354 = vmatpush3.bf16.msra.mxu1 %v329_v16 }
  0x15   :  { %331 = vmatprep.subr.bf16.mxu0 %v384_v3  ;;  %355 = vmatprep.subr.bf16.mxu1 %v384_v3 }
  0x18   :  { %333 = vmatpush3.bf16.msra.mxu0 %v332_v19  ;;  %357 = vmatpush3.bf16.msra.mxu1 %v332_v19 }
  0x19   :  { %334 = vmatprep.subr.bf16.mxu0 %v384_v3  ;;  %358 = vmatprep.subr.bf16.mxu1 %v384_v3 }
  0x1c   :  { %336 = vmatpush3.bf16.msra.mxu0 %v335_v22  ;;  %360 = vmatpush3.bf16.msra.mxu1 %v335_v22 }
  0x1d   :  { %337 = vmatprep.subr.bf16.mxu0 %v384_v3  ;;  %361 = vmatprep.subr.bf16.mxu1 %v384_v3 }
  0x20   :  { %339 = vmatpush3.bf16.msra.mxu0 %v338_v25  ;;  %363 = vmatpush3.bf16.msra.mxu1 %v338_v25 }
  0x23   :  { %279 = vmatmul.mubr.f32.vlgmr.msra.gmra.mrb[0].mxu0 %v31_v26  ;;  %314 = vmatmul.mubr.f32.vlgmr.msra.gmra.mrb[0].mxu1 %v32_v27 }
  0xf6   :  { %v99_v28 = vpop.f32.mrb[0].mxu0  ;;  %v179_v29 = vpop.f32.mrb[0].mxu1 }
  0xf7   :  { %v280_v30 = vpop.f32.mrb[1].mxu0  ;;  %v103_v31 = vmul.f32 %v99_v28, %v31_v26  ;;  %v315_v32 = vpop.f32.mrb[1].mxu1  ;;  %v183_v33 = vmul.f32 %v179_v29, %v32_v27 }
  0xf9   :  { %104 = vadd.xlane.f32.xlu0 %v103_v31 }
  0xfd   :  { %184 = vadd.xlane.f32.xlu0 %v183_v33 }
 0x186   :  { %v105_v34 = vpop.xlane.xlu0 %104 }
 0x187   :  { %v106_v35 = vrot.slane %v105_v34, 4 }
 0x189   :  { %v107_v36 = vadd.f32 %v106_v35, %v105_v34 }
 0x18a   :  { %v185_v37 = vpop.xlane.xlu0 %184 }
 0x18b   :  { %v108_v38 = vrot.slane %v107_v36, 2  ;;  %v186_v39 = vrot.slane %v185_v37, 4 }
 0x18d   :  { %v187_v40 = vadd.f32 %v186_v39, %v185_v37  ;;  %v109_v41 = vadd.f32 %v108_v38, %v107_v36 }
 0x18f   :  { %v188_v42 = vrot.slane %v187_v40, 2  ;;  %v110_v43 = vrot.slane %v109_v41, 1 }
 0x191   :  { %v189_v44 = vadd.f32 %v188_v42, %v187_v40  ;;  %v111_v45 = vadd.f32 %v110_v43, %v109_v41 }
 0x193   :  { %364 = vpush %v111_v45  ;;  %v190_v46 = vrot.slane %v189_v44, 1 }
 0x195   :  { %v191_v47 = vadd.f32 %v190_v46, %v189_v44 }
 0x197   :  { %366 = vpush %v191_v47 }
 0x1c4   :  { %s365_s0 = spop %364 }
 0x1c5   :  { %s194_s1 = smul.f32 0.125, %s365_s0 }
 0x1c8   :  { %s367_s2 = spop %366 }
 0x1c9   :  { %s193_s21 = smul.f32 0.125, %s367_s2 }
 0x1cb   :  { %s195_s22 = ssub.f32 %s193_s21, %s194_s1 }
 0x1cd   :  { %s196_s23 = smul.f32 0.0078125, %s195_s22 }
 0x1cf   :  { %198 = sst [smem:[#allocation2]] %s196_s23 }
 0x1d0   :  { %381 = shalt.err (!%p378_p2)
}
 0x1d1   :  { %s387_s4 = smov [#allocation2]  }
 0x1d2   :  { %206 = dma.smem_to_hbm %s387_s4, 16, %s477_s3, [#allocation3]  }
 0x1d3   :  { %382 = dma.done.wait [#allocation3], 16  }
 0x1d4   :  { %383 = vsyncadd [#allocation3], 4294967280 }
 0x1d5   :  { %210 = sfence }
 0x1d6   :  { %211 = vsyncpa [#allocation3], 1 }

// kernel: boltzmann_train_forward.6
= control target key start
LH: loop header
LB: loop body
LE: loop exit
PB: predicated region body
PF: predicated region fallthrough
CT: control target
= control target key end

     0   :  { %v502_v0 = vmov 0.0   ;;  %vm503_vm0 = vmmov 0   ;;  %s695_s1 = inlined_call_operand.vmem [shape: bf16[128,128], index: 1, kind: input, shape index: {}]   ;;  %s696_s0 = inlined_call_operand.vmem [shape: f32[8,128], index: 0, kind: input, shape index: {}]   ;;  %s697_s2 = inlined_call_operand.vmem [shape: f32[5,8,128], index: 2, kind: input, shape index: {}]   ;;  %s698_s3 = inlined_call_operand.vmem [shape: f32[5,8,128], index: 3, kind: input, shape index: {}]   ;;  %s699_s4 = inlined_call_operand.vmem [shape: f32[8,128], index: 4, kind: output, shape index: {}]  }
   0x1   :  { %392 = vmatprep.subr.bf16.mxu0 %v502_v0  ;;  %v533_v1 = vld [vmem:[%s695_s1] sm:$0xff]   ;;  %408 = vmatprep.mubr.msk.bf16.mxu0 %vm503_vm0, %v502_v0  ;;  %v544_v2 = vld [vmem:[%s695_s1 + $0x8] sm:$0xff]   ;;  %v553_v3 = vld [vmem:[%s695_s1 + $0x10] sm:$0xff]  }
   0x2   :  { %412 = vmatprep.subr.bf16.mxu1 %v502_v0  ;;  %428 = vmatprep.mubr.msk.bf16.mxu1 %vm503_vm0, %v502_v0  ;;  %v562_v4 = vld [vmem:[%s695_s1 + $0x18] sm:$0xff]   ;;  %v571_v5 = vld [vmem:[%s695_s1 + $0x20] sm:$0xff]   ;;  %v580_v6 = vld [vmem:[%s695_s1 + $0x28] sm:$0xff]  }
   0x3   :  { %393 = vmatpush3.bf16.msra.mxu0 %v533_v1  ;;  %413 = vmatpush3.bf16.msra.mxu1 %v533_v1  ;;  %v589_v7 = vld [vmem:[%s695_s1 + $0x30] sm:$0xff]   ;;  %v598_v8 = vld [vmem:[%s695_s1 + $0x38] sm:$0xff]   ;;  %v34_v9 = vld [vmem:[%s696_s0] sm:$0xff] }
   0x4   :  { %394 = vmatprep.subr.bf16.mxu0 %v502_v0  ;;  %414 = vmatprep.subr.bf16.mxu1 %v502_v0  ;;  %v35_v10 = vpack.c.bf16 %v34_v9, %v34_v9  ;;  %v36_v11 = vld [vmem:[%s697_s2] sm:$0xff]  ;;  %v339_v22 = vld [vmem:[%s697_s2 + $0x8] sm:$0xff]  ;;  %v341_v33 = vld [vmem:[%s697_s2 + $0x10] sm:$0xff] }
   0x5   :  { %v127_v17 = vld [vmem:[%s698_s3] sm:$0xff]  ;;  %v340_v28 = vld [vmem:[%s698_s3 + $0x8] sm:$0xff]  ;;  %v342_v39 = vld [vmem:[%s698_s3 + $0x10] sm:$0xff] }
   0x6   :  { %v343_v44 = vld [vmem:[%s697_s2 + $0x18] sm:$0xff]  ;;  %v345_v55 = vld [vmem:[%s697_s2 + $0x20] sm:$0xff] }
   0x7   :  { %395 = vmatpush3.bf16.msra.mxu0 %v544_v2  ;;  %415 = vmatpush3.bf16.msra.mxu1 %v544_v2  ;;  %v344_v50 = vld [vmem:[%s698_s3 + $0x18] sm:$0xff]  ;;  %v346_v61 = vld [vmem:[%s698_s3 + $0x20] sm:$0xff] }
   0x8   :  { %396 = vmatprep.subr.bf16.mxu0 %v502_v0  ;;  %416 = vmatprep.subr.bf16.mxu1 %v502_v0 }
   0xb   :  { %397 = vmatpush3.bf16.msra.mxu0 %v553_v3  ;;  %417 = vmatpush3.bf16.msra.mxu1 %v553_v3 }
   0xc   :  { %398 = vmatprep.subr.bf16.mxu0 %v502_v0  ;;  %418 = vmatprep.subr.bf16.mxu1 %v502_v0 }
   0xf   :  { %399 = vmatpush3.bf16.msra.mxu0 %v562_v4  ;;  %419 = vmatpush3.bf16.msra.mxu1 %v562_v4 }
  0x10   :  { %400 = vmatprep.subr.bf16.mxu0 %v502_v0  ;;  %420 = vmatprep.subr.bf16.mxu1 %v502_v0 }
  0x13   :  { %401 = vmatpush3.bf16.msra.mxu0 %v571_v5  ;;  %421 = vmatpush3.bf16.msra.mxu1 %v571_v5 }
  0x14   :  { %402 = vmatprep.subr.bf16.mxu0 %v502_v0  ;;  %422 = vmatprep.subr.bf16.mxu1 %v502_v0 }
  0x17   :  { %403 = vmatpush3.bf16.msra.mxu0 %v580_v6  ;;  %423 = vmatpush3.bf16.msra.mxu1 %v580_v6 }
  0x18   :  { %404 = vmatprep.subr.bf16.mxu0 %v502_v0  ;;  %424 = vmatprep.subr.bf16.mxu1 %v502_v0 }
  0x1b   :  { %405 = vmatpush3.bf16.msra.mxu0 %v589_v7  ;;  %425 = vmatpush3.bf16.msra.mxu1 %v589_v7 }
  0x1c   :  { %406 = vmatprep.subr.bf16.mxu0 %v502_v0  ;;  %426 = vmatprep.subr.bf16.mxu1 %v502_v0 }
  0x1f   :  { %407 = vmatpush3.bf16.msra.mxu0 %v598_v8  ;;  %427 = vmatpush3.bf16.msra.mxu1 %v598_v8 }
  0x20   :  { %432 = vmatprep.subr.bf16.mxu0 %v502_v0  ;;  %452 = vmatprep.subr.bf16.mxu1 %v502_v0 }
  0x22   :  { %409 = vmatmul.mubr.bf16.vlgmr.msra.gmra.mrb[0].mxu0 %v35_v10 }
  0x23   :  { %433 = vmatpush3.bf16.msra.mxu0 %v533_v1  ;;  %448 = vmatprep.mubr.msk.bf16.mxu0 %vm503_vm0, %v502_v0 }
  0x24   :  { %434 = vmatprep.subr.bf16.mxu0 %v502_v0 }
  0x27   :  { %435 = vmatpush3.bf16.msra.mxu0 %v544_v2 }
  0x28   :  { %436 = vmatprep.subr.bf16.mxu0 %v502_v0 }
  0x2b   :  { %437 = vmatpush3.bf16.msra.mxu0 %v553_v3 }
  0x2c   :  { %438 = vmatprep.subr.bf16.mxu0 %v502_v0 }
  0x2f   :  { %439 = vmatpush3.bf16.msra.mxu0 %v562_v4 }
  0x30   :  { %440 = vmatprep.subr.bf16.mxu0 %v502_v0 }
  0x33   :  { %441 = vmatpush3.bf16.msra.mxu0 %v571_v5 }
  0x34   :  { %442 = vmatprep.subr.bf16.mxu0 %v502_v0 }
  0x37   :  { %443 = vmatpush3.bf16.msra.mxu0 %v580_v6 }
  0x38   :  { %444 = vmatprep.subr.bf16.mxu0 %v502_v0 }
  0x3b   :  { %445 = vmatpush3.bf16.msra.mxu0 %v589_v7 }
  0x3c   :  { %446 = vmatprep.subr.bf16.mxu0 %v502_v0 }
  0x3f   :  { %447 = vmatpush3.bf16.msra.mxu0 %v598_v8 }
  0x40   :  { %472 = vmatprep.subr.bf16.mxu0 %v502_v0 }
  0xf5   :  { %v119_v12 = vpop.f32.mrb[0].mxu0 }
  0xf6   :  { %v120_v13 = vadd.f32 %v119_v12, %v36_v11  ;;  %v410_v14 = vpop.f32.mrb[1].mxu0 }
  0xf7   :  { %v122_v15 = vpop.f32.mrb[2].mxu0 }
  0xf8   :  { %v125_v16 = vmul.f32 %v120_v13, %v34_v9  ;;  %v411_v18 = vpop.f32.mrb[3].mxu0 }
  0xfa   :  { %vm126_vm1 = vcmp.lt.f32.partialorder %v125_v16, 0.0 }
  0xfb   :  { %v128_v19 = vsel %vm126_vm1, %v127_v17, 1.0 }
  0xfc   :  { %v129_v20 = vmul.f32 %v128_v19, %v34_v9 }
  0xfe   :  { %v130_v21 = vpack.c.bf16 %v129_v20, %v129_v20 }
 0x100   :  { %429 = vmatmul.mubr.bf16.vlgmr.msra.gmra.mrb[0].mxu1 %v130_v21 }
 0x101   :  { %453 = vmatpush3.bf16.msra.mxu1 %v533_v1  ;;  %468 = vmatprep.mubr.msk.bf16.mxu1 %vm503_vm0, %v502_v0 }
 0x102   :  { %454 = vmatprep.subr.bf16.mxu1 %v502_v0 }
 0x105   :  { %455 = vmatpush3.bf16.msra.mxu1 %v544_v2 }
 0x106   :  { %456 = vmatprep.subr.bf16.mxu1 %v502_v0 }
 0x109   :  { %457 = vmatpush3.bf16.msra.mxu1 %v553_v3 }
 0x10a   :  { %458 = vmatprep.subr.bf16.mxu1 %v502_v0 }
 0x10d   :  { %459 = vmatpush3.bf16.msra.mxu1 %v562_v4 }
 0x10e   :  { %460 = vmatprep.subr.bf16.mxu1 %v502_v0 }
 0x111   :  { %461 = vmatpush3.bf16.msra.mxu1 %v571_v5 }
 0x112   :  { %462 = vmatprep.subr.bf16.mxu1 %v502_v0 }
 0x115   :  { %463 = vmatpush3.bf16.msra.mxu1 %v580_v6 }
 0x116   :  { %464 = vmatprep.subr.bf16.mxu1 %v502_v0 }
 0x119   :  { %465 = vmatpush3.bf16.msra.mxu1 %v589_v7 }
 0x11a   :  { %466 = vmatprep.subr.bf16.mxu1 %v502_v0 }
 0x11d   :  { %467 = vmatpush3.bf16.msra.mxu1 %v598_v8 }
 0x1d3   :  { %v167_v23 = vpop.f32.mrb[0].mxu1 }
 0x1d4   :  { %v168_v24 = vadd.f32 %v339_v22, %v167_v23  ;;  %v430_v25 = vpop.f32.mrb[1].mxu1 }
 0x1d5   :  { %v170_v26 = vpop.f32.mrb[2].mxu1 }
 0x1d6   :  { %v173_v27 = vmul.f32 %v168_v24, %v129_v20  ;;  %v431_v29 = vpop.f32.mrb[3].mxu1 }
 0x1d8   :  { %vm174_vm2 = vcmp.lt.f32.partialorder %v173_v27, 0.0 }
 0x1d9   :  { %v177_v30 = vsel %vm174_vm2, %v340_v28, 1.0 }
 0x1da   :  { %v178_v31 = vmul.f32 %v177_v30, %v129_v20 }
 0x1dc   :  { %v179_v32 = vpack.c.bf16 %v178_v31, %v178_v31 }
 0x1de   :  { %449 = vmatmul.mubr.bf16.vlgmr.msra.gmra.mrb[4].mxu0 %v179_v32 }
 0x1df   :  { %473 = vmatpush3.bf16.msra.mxu0 %v533_v1  ;;  %488 = vmatprep.mubr.msk.bf16.mxu0 %vm503_vm0, %v502_v0 }
 0x1e0   :  { %474 = vmatprep.subr.bf16.mxu0 %v502_v0 }
 0x1e3   :  { %475 = vmatpush3.bf16.msra.mxu0 %v544_v2 }
 0x1e4   :  { %476 = vmatprep.subr.bf16.mxu0 %v502_v0 }
 0x1e7   :  { %477 = vmatpush3.bf16.msra.mxu0 %v553_v3 }
 0x1e8   :  { %478 = vmatprep.subr.bf16.mxu0 %v502_v0 }
 0x1eb   :  { %479 = vmatpush3.bf16.msra.mxu0 %v562_v4 }
 0x1ec   :  { %480 = vmatprep.subr.bf16.mxu0 %v502_v0 }
 0x1ef   :  { %481 = vmatpush3.bf16.msra.mxu0 %v571_v5 }
 0x1f0   :  { %482 = vmatprep.subr.bf16.mxu0 %v502_v0 }
 0x1f3   :  { %483 = vmatpush3.bf16.msra.mxu0 %v580_v6 }
 0x1f4   :  { %484 = vmatprep.subr.bf16.mxu0 %v502_v0 }
 0x1f7   :  { %485 = vmatpush3.bf16.msra.mxu0 %v589_v7 }
 0x1f8   :  { %486 = vmatprep.subr.bf16.mxu0 %v502_v0 }
 0x1fb   :  { %487 = vmatpush3.bf16.msra.mxu0 %v598_v8 }
 0x2b1   :  { %v216_v34 = vpop.f32.mrb[4].mxu0 }
 0x2b2   :  { %v217_v35 = vadd.f32 %v341_v33, %v216_v34  ;;  %v450_v36 = vpop.f32.mrb[5].mxu0 }
 0x2b3   :  { %v219_v37 = vpop.f32.mrb[6].mxu0 }
 0x2b4   :  { %v222_v38 = vmul.f32 %v217_v35, %v178_v31  ;;  %v451_v40 = vpop.f32.mrb[7].mxu0 }
 0x2b6   :  { %vm223_vm3 = vcmp.lt.f32.partialorder %v222_v38, 0.0 }
 0x2b7   :  { %v226_v41 = vsel %vm223_vm3, %v342_v39, 1.0 }
 0x2b8   :  { %v227_v42 = vmul.f32 %v226_v41, %v178_v31 }
 0x2ba   :  { %v228_v43 = vpack.c.bf16 %v227_v42, %v227_v42 }
 0x2bc   :  { %469 = vmatmul.mubr.bf16.vlgmr.msra.gmra.mrb[4].mxu1 %v228_v43 }
 0x38f   :  { %v265_v45 = vpop.f32.mrb[4].mxu1 }
 0x390   :  { %v266_v46 = vadd.f32 %v343_v44, %v265_v45  ;;  %v470_v47 = vpop.f32.mrb[5].mxu1 }
 0x391   :  { %v268_v48 = vpop.f32.mrb[6].mxu1 }
 0x392   :  { %v271_v49 = vmul.f32 %v266_v46, %v227_v42  ;;  %v471_v51 = vpop.f32.mrb[7].mxu1 }
 0x394   :  { %vm272_vm4 = vcmp.lt.f32.partialorder %v271_v49, 0.0 }
 0x395   :  { %v275_v52 = vsel %vm272_vm4, %v344_v50, 1.0 }
 0x396   :  { %v276_v53 = vmul.f32 %v275_v52, %v227_v42 }
 0x398   :  { %v277_v54 = vpack.c.bf16 %v276_v53, %v276_v53 }
 0x39a   :  { %489 = vmatmul.mubr.bf16.vlgmr.msra.gmra.mrb[8].mxu0 %v277_v54 }
 0x46d   :  { %v314_v56 = vpop.f32.mrb[8].mxu0 }
 0x46e   :  { %v315_v57 = vadd.f32 %v345_v55, %v314_v56  ;;  %v490_v58 = vpop.f32.mrb[9].mxu0 }
 0x46f   :  { %v317_v59 = vpop.f32.mrb[10].mxu0 }
 0x470   :  { %v320_v60 = vmul.f32 %v315_v57, %v276_v53  ;;  %v491_v62 = vpop.f32.mrb[11].mxu0 }
 0x472   :  { %vm321_vm5 = vcmp.lt.f32.partialorder %v320_v60, 0.0 }
 0x473   :  { %v324_v63 = vsel %vm321_vm5, %v346_v61, 1.0 }
 0x474   :  { %v325_v0 = vmul.f32 %v324_v63, %v276_v53 }
 0x476   :  { %326 = vst [vmem:[%s699_s4] sm:$0xff] %v325_v0 }

</bundles_post_ra>
